<compile_context>
chip_gen: v5e
topology: v5e:2x2
jax: 0.10.0
libtpu: 0.0.40
codegen_flags: <defaults>
</compile_context>

<pallas_src>
import jax
import jax.numpy as jnp
from jax.experimental import pallas as pl
from jax.experimental.pallas import tpu as pltpu

MID = 128          # mid_channels in the PyTorch module
BN_EPS = 1e-5      # BatchNorm2d default eps
CPAD = 128         # num_classes padded to a full lane group for dense stores
_POS1 = 16         # conv1 output positions (4 x 4)


# ---------------------------------------------------------------------------
# Fused Pallas kernel: conv1+BN+ReLU -> conv2+BN+ReLU -> avgpool -> Linear
# ---------------------------------------------------------------------------
def _msd_head_kernel(a_ref, w1_ref, b1_ref, w2_ref, b2_ref, wfc_ref, bfc_ref,
                     o_ref):
    # a_ref  : (BT*16, 9*cin) bf16  conv1 im2col LHS; rows ordered
    #          (spatial_pos, image), K ordered (tap-major, cin-minor).
    # w1_ref : (9*cin, 128) bf16    conv1 weights with BN1 scale folded in.
    # b1_ref : (1, 128) f32         folded BN1 bias.
    # w2_ref : (9*128, 128) bf16    conv2 weights with BN2 scale folded in.
    # b2_ref : (1, 128) f32         folded BN2 bias.
    # wfc_ref: (128, CPAD) bf16     FC weights * 0.25 (avg-pool folded), padded.
    # bfc_ref: (1, CPAD) f32        FC bias (zero-padded, NOT scaled).
    # o_ref  : (BT, CPAD) f32
    f32 = jnp.float32
    bf16 = jnp.bfloat16
    bt = a_ref.shape[0] // _POS1           # images per tile (static)

    # ---- conv1 (3x3, stride 2, pad 1): one im2col MXU matmul ----------------
    # M = 16*BT, K = 9*cin, N = 128.
    y1 = jnp.dot(a_ref[...], w1_ref[...], preferred_element_type=f32)
    y1 = jnp.maximum(y1 + b1_ref[...], 0.0)            # (16*BT, 128) f32
    y1b = y1.astype(bf16)                               # single full cast

    # ---- conv2 (3x3, stride 2, pad 1) on the VMEM-resident y1 ---------------
    # Build the in-kernel im2col LHS (4*BT, 1152): for each of the 4 output
    # positions, concatenate its 9 taps (zero blocks where the tap falls in
    # padding), then one MXU matmul against W2 (1152, 128).
    zero_blk = jnp.zeros((bt, MID), bf16)

    def tap_block(r, c):
        if 0 <= r < 4 and 0 <= c < 4:
            p = r * 4 + c
            return y1b[p * bt:(p + 1) * bt, :]
        return zero_blk

    pos_rows = []
    for oh in range(2):
        for ow in range(2):
            taps = [tap_block(2 * oh + kh - 1, 2 * ow + kw - 1)
                    for kh in range(3) for kw in range(3)]
            pos_rows.append(jnp.concatenate(taps, axis=1))      # (BT, 1152)
    lhs2 = jnp.concatenate(pos_rows, axis=0)                     # (4*BT, 1152)

    y2 = jnp.dot(lhs2, w2_ref[...], preferred_element_type=f32)
    y2 = jnp.maximum(y2 + b2_ref[...], 0.0)                      # (4*BT, 128)

    # ---- AvgPool2d(2): VPU sum of the 4 positions (0.25 folded into WFC) ----
    pooled = (y2[0:bt, :] + y2[bt:2 * bt, :]
              + y2[2 * bt:3 * bt, :] + y2[3 * bt:4 * bt, :])     # (BT, 128) f32

    # ---- Linear --------------------------------------------------------------
    out = jnp.dot(pooled.astype(bf16), wfc_ref[...],
                  preferred_element_type=f32) + bfc_ref[...]
    o_ref[...] = out                                             # lane-dense


# ---------------------------------------------------------------------------
# Parameters (deterministic, synthetic). BN (eval mode) folded to scale/bias.
# ---------------------------------------------------------------------------
def init_params(key, in_channels, num_classes):
    ks = jax.random.split(key, 12)

    def folded_bn(kg, kb, km, kv, c):
        gamma = 1.0 + 0.1 * jax.random.normal(kg, (c,), jnp.float32)
        beta = 0.1 * jax.random.normal(kb, (c,), jnp.float32)
        mean = 0.1 * jax.random.normal(km, (c,), jnp.float32)
        var = jax.random.uniform(kv, (c,), jnp.float32, 0.5, 1.5)
        s = gamma / jnp.sqrt(var + BN_EPS)
        return s, beta - mean * s

    # conv weights in HWIO (kh, kw, cin, cout).
    w1 = 0.1 * jax.random.normal(ks[0], (3, 3, in_channels, MID), jnp.float32)
    s1, b1 = folded_bn(ks[1], ks[2], ks[3], ks[4], MID)
    w2 = 0.1 * jax.random.normal(ks[5], (3, 3, MID, MID), jnp.float32)
    s2, b2 = folded_bn(ks[6], ks[7], ks[8], ks[9], MID)
    wfc = 0.1 * jax.random.normal(ks[10], (MID, num_classes), jnp.float32)
    bfc = 0.1 * jax.random.normal(ks[11], (num_classes,), jnp.float32)
    return (w1, s1, b1, w2, s2, b2, wfc, bfc)


def prepare_kernel_params(raw):
    """One-time preprocessing: fold BN scale into conv weights, reshape to
    im2col weight matrices, fold the 0.25 avg-pool scale into the FC weights,
    pad FC to 128 lanes, cast MXU operands to bf16."""
    w1, s1, b1, w2, s2, b2, wfc, bfc = raw
    cin = w1.shape[2]
    num_classes = wfc.shape[1]
    W1 = (w1 * s1).reshape(9 * cin, MID).astype(jnp.bfloat16)   # K tap-major
    W2 = (w2 * s2).reshape(9 * MID, MID).astype(jnp.bfloat16)   # K tap-major
    B1 = b1.reshape(1, MID).astype(jnp.float32)
    B2 = b2.reshape(1, MID).astype(jnp.float32)
    # 0.25 pool scale folded into WFC only (power-of-two, exact in bf16).
    WFC = jnp.pad(0.25 * wfc,
                  ((0, 0), (0, CPAD - num_classes))).astype(jnp.bfloat16)
    BFC = jnp.pad(bfc, (0, CPAD - num_classes)).reshape(1, CPAD).astype(
        jnp.float32)
    return (W1, B1, W2, B2, WFC, BFC)


# ---------------------------------------------------------------------------
# Batch tiling
# ---------------------------------------------------------------------------
def _pick_batch_tile(n):
    """Images per grid step: a multiple of 8 (sublane), capped at 64, and for
    batches >= 16 chosen so there are at least two grid steps (so the
    "parallel" grid axis can shard across v7x's two TensorCores)."""
    n8 = ((n + 7) // 8) * 8
    if n8 <= 8:
        return 8
    half = (((n8 // 2) + 7) // 8) * 8
    return min(64, half)


# ---------------------------------------------------------------------------
# Forward pass (thin wrapper + single pallas_call)
# ---------------------------------------------------------------------------
def msd_classifier_forward(x_nchw, kparams, num_classes):
    W1, B1, W2, B2, WFC, BFC = kparams
    n, cin, h, w = x_nchw.shape
    assert h == 8 and w == 8, "MSDNet CIFAR-10 classifier operates on 8x8 maps"
    bt = _pick_batch_tile(n)
    nb = (n + bt - 1) // bt
    n_pad = nb * bt

    # Thin glue: NCHW->NHWC, pad batch to a tile multiple, pad spatial by 1 and
    # build the conv1 im2col LHS (nb*16*bt, 9*cin) in a single
    # transpose+reshape path: rows ordered (tile, pos, image), K ordered
    # (tap-major, cin-minor) to match W1.reshape(9*cin, 128).
    x = jnp.transpose(x_nchw, (0, 2, 3, 1)).astype(jnp.float32)   # (N,8,8,C)
    x = jnp.pad(x, ((0, n_pad - n), (0, 0), (0, 0), (0, 0)))
    xp = jnp.pad(x, ((0, 0), (1, 1), (1, 1), (0, 0)))             # (Np,10,10,C)
    taps = jnp.stack([xp[:, kh:kh + 8:2, kw:kw + 8:2, :]
                      for kh in range(3) for kw in range(3)],
                     axis=3)                                       # (Np,4,4,9,C)
    a = taps.reshape(nb, bt, _POS1, 9 * cin)
    a = a.transpose(0, 2, 1, 3).reshape(nb * _POS1 * bt,
                                        9 * cin).astype(jnp.bfloat16)

    rows = bt * _POS1                      # conv1 output rows per batch tile
    out = pl.pallas_call(
        _msd_head_kernel,
        out_shape=jax.ShapeDtypeStruct((n_pad, CPAD), jnp.float32),
        grid=(nb,),
        in_specs=[
            pl.BlockSpec((rows, 9 * cin), lambda i: (i, 0)),   # per-tile LHS
            pl.BlockSpec((9 * cin, MID), lambda i: (0, 0)),    # weights stay
            pl.BlockSpec((1, MID), lambda i: (0, 0)),          #   resident
            pl.BlockSpec((9 * MID, MID), lambda i: (0, 0)),    #   (constant
            pl.BlockSpec((1, MID), lambda i: (0, 0)),          #    index_maps)
            pl.BlockSpec((MID, CPAD), lambda i: (0, 0)),
            pl.BlockSpec((1, CPAD), lambda i: (0, 0)),
        ],
        out_specs=pl.BlockSpec((bt, CPAD), lambda i: (i, 0)),
        compiler_params=pltpu.CompilerParams(
            dimension_semantics=("parallel",)),   # shard tiles on v7x TCs
    )(a, W1, B1, W2, B2, WFC, BFC)
    return out[:n, :num_classes]


# ---------------------------------------------------------------------------
# Pure-JAX reference (same bf16 operand quantization points, f32 accumulation)
# ---------------------------------------------------------------------------
def reference_forward(x_nchw, raw):
    w1, s1, b1, w2, s2, b2, wfc, bfc = raw
    x = jnp.transpose(x_nchw, (0, 2, 3, 1)).astype(jnp.float32)
    w1b = (w1 * s1).astype(jnp.bfloat16)
    w2b = (w2 * s2).astype(jnp.bfloat16)
    wfcb = wfc.astype(jnp.bfloat16)

    def conv(y, wb):
        dn = jax.lax.conv_dimension_numbers(y.shape, wb.shape,
                                            ("NHWC", "HWIO", "NHWC"))
        return jax.lax.conv_general_dilated(
            y.astype(jnp.bfloat16), wb, (2, 2), ((1, 1), (1, 1)),
            dimension_numbers=dn, preferred_element_type=jnp.float32)

    y = jnp.maximum(conv(x, w1b) + b1.reshape(1, 1, 1, -1), 0.0)
    y = jnp.maximum(conv(y, w2b) + b2.reshape(1, 1, 1, -1), 0.0)
    pooled = jnp.mean(y, axis=(1, 2))                              # (N,128) f32
    return jnp.dot(pooled.astype(jnp.bfloat16), wfcb,
                   preferred_element_type=jnp.float32) + bfc


if __name__ == "__main__":
    in_channels, num_classes = 16, 10
    spatial = 8                      # MSDNet CIFAR-10 head sees 8x8 maps

    key = jax.random.PRNGKey(0)
    kx, kp = jax.random.split(key)
    raw = init_params(kp, in_channels, num_classes)
    kparams = prepare_kernel_params(raw)                 # fold/reshape once

    fwd = jax.jit(lambda xb, p: msd_classifier_forward(xb, p, num_classes))

    # Main small-batch check (batch=2, NCHW like PyTorch).
    x = jax.random.normal(kx, (2, in_channels, spatial, spatial), jnp.float32)
    out = jax.block_until_ready(fwd(x, kparams))
    ref = jax.block_until_ready(reference_forward(x, raw))
    assert out.shape == (2, num_classes)
    assert jnp.allclose(out, ref, atol=5e-3, rtol=5e-3), \
        float(jnp.max(jnp.abs(out - ref)))

    # Multi-tile, non-multiple batch check: locks in the (pos, image) row
    # ordering contract across grid steps and the batch-pad/slice path.
    x2 = jax.random.normal(jax.random.PRNGKey(1),
                           (19, in_channels, spatial, spatial), jnp.float32)
    out2 = jax.block_until_ready(fwd(x2, kparams))
    ref2 = jax.block_until_ready(reference_forward(x2, raw))
    assert out2.shape == (19, num_classes)
    assert jnp.allclose(out2, ref2, atol=5e-3, rtol=5e-3), \
        float(jnp.max(jnp.abs(out2 - ref2)))

    print("KERNEL_OK")
</pallas_src>

<mosaic_0001>
module attributes {stable_mosaic.version = 11 : i64} {
  func.func @_msd_head_kernel(%arg0: i32, %arg1: memref<128x144xbf16, #tpu.memory_space<vmem>>, %arg2: memref<144x128xbf16, #tpu.memory_space<vmem>>, %arg3: memref<1x128xf32, #tpu.memory_space<vmem>>, %arg4: memref<1152x128xbf16, #tpu.memory_space<vmem>>, %arg5: memref<1x128xf32, #tpu.memory_space<vmem>>, %arg6: memref<128x128xbf16, #tpu.memory_space<vmem>>, %arg7: memref<1x128xf32, #tpu.memory_space<vmem>>, %arg8: memref<8x128xf32, #tpu.memory_space<vmem>>) attributes {dimension_semantics = [#tpu.dimension_semantics<parallel>], iteration_bounds = array<i64: 1>, scalar_prefetch = 0 : i64, scratch_operands = 0 : i64, tpu.core_type = #tpu.core_type<tc>, window_params = [{transform_indices = @transform_0, window_bounds = array<i64: 128, 144>}, {pipeline_mode = #tpu.pipeline_mode<synchronous>, transform_indices = @transform_1, window_bounds = array<i64: 144, 128>}, {pipeline_mode = #tpu.pipeline_mode<synchronous>, transform_indices = @transform_2, window_bounds = array<i64: 1, 128>}, {pipeline_mode = #tpu.pipeline_mode<synchronous>, transform_indices = @transform_3, window_bounds = array<i64: 1152, 128>}, {pipeline_mode = #tpu.pipeline_mode<synchronous>, transform_indices = @transform_4, window_bounds = array<i64: 1, 128>}, {pipeline_mode = #tpu.pipeline_mode<synchronous>, transform_indices = @transform_5, window_bounds = array<i64: 128, 128>}, {pipeline_mode = #tpu.pipeline_mode<synchronous>, transform_indices = @transform_6, window_bounds = array<i64: 1, 128>}, {transform_indices = @transform_7, window_bounds = array<i64: 8, 128>}]} {
    %c0 = arith.constant 0 : index
    %c0_0 = arith.constant 0 : index
    %0 = vector.load %arg1[%c0, %c0_0] : memref<128x144xbf16, #tpu.memory_space<vmem>>, vector<128x144xbf16>
    %c0_1 = arith.constant 0 : index
    %c0_2 = arith.constant 0 : index
    %1 = vector.load %arg2[%c0_1, %c0_2] : memref<144x128xbf16, #tpu.memory_space<vmem>>, vector<144x128xbf16>
    %cst = arith.constant dense<0.000000e+00> : vector<128x128xf32>
    %2 = tpu.matmul %0, %1, %cst {dimension_numbers = #tpu.dot_dimension_numbers<[1], [0], [0], [1], [0, 0, 1, 1], [], []>} : vector<128x144xbf16>, vector<144x128xbf16>, vector<128x128xf32> -> vector<128x128xf32>
    %c0_3 = arith.constant 0 : index
    %c0_4 = arith.constant 0 : index
    %3 = vector.load %arg3[%c0_3, %c0_4] : memref<1x128xf32, #tpu.memory_space<vmem>>, vector<1x128xf32>
    %4 = vector.broadcast %3 : vector<1x128xf32> to vector<128x128xf32>
    %5 = arith.addf %2, %4 : vector<128x128xf32>
    %cst_5 = arith.constant 0.000000e+00 : f32
    %6 = vector.broadcast %cst_5 : f32 to vector<128x128xf32>
    %7 = arith.maximumf %5, %6 : vector<128x128xf32>
    %8 = arith.truncf %7 : vector<128x128xf32> to vector<128x128xbf16>
    %cst_6 = arith.constant 0.000000e+00 : bf16
    %9 = vector.broadcast %cst_6 : bf16 to vector<8x128xbf16>
    %10 = vector.extract_strided_slice %8 {offsets = [0, 0], sizes = [8, 128], strides = [1, 1]} : vector<128x128xbf16> to vector<8x128xbf16>
    %11 = vector.extract_strided_slice %8 {offsets = [8, 0], sizes = [8, 128], strides = [1, 1]} : vector<128x128xbf16> to vector<8x128xbf16>
    %12 = vector.extract_strided_slice %8 {offsets = [32, 0], sizes = [8, 128], strides = [1, 1]} : vector<128x128xbf16> to vector<8x128xbf16>
    %13 = vector.extract_strided_slice %8 {offsets = [40, 0], sizes = [8, 128], strides = [1, 1]} : vector<128x128xbf16> to vector<8x128xbf16>
    %14 = tpu.concatenate %9, %9, %9, %9, %10, %11, %9, %12, %13 in 1 : vector<8x128xbf16>, vector<8x128xbf16>, vector<8x128xbf16>, vector<8x128xbf16>, vector<8x128xbf16>, vector<8x128xbf16>, vector<8x128xbf16>, vector<8x128xbf16>, vector<8x128xbf16> -> vector<8x1152xbf16>
    %15 = vector.extract_strided_slice %8 {offsets = [8, 0], sizes = [8, 128], strides = [1, 1]} : vector<128x128xbf16> to vector<8x128xbf16>
    %16 = vector.extract_strided_slice %8 {offsets = [16, 0], sizes = [8, 128], strides = [1, 1]} : vector<128x128xbf16> to vector<8x128xbf16>
    %17 = vector.extract_strided_slice %8 {offsets = [24, 0], sizes = [8, 128], strides = [1, 1]} : vector<128x128xbf16> to vector<8x128xbf16>
    %18 = vector.extract_strided_slice %8 {offsets = [40, 0], sizes = [8, 128], strides = [1, 1]} : vector<128x128xbf16> to vector<8x128xbf16>
    %19 = vector.extract_strided_slice %8 {offsets = [48, 0], sizes = [8, 128], strides = [1, 1]} : vector<128x128xbf16> to vector<8x128xbf16>
    %20 = vector.extract_strided_slice %8 {offsets = [56, 0], sizes = [8, 128], strides = [1, 1]} : vector<128x128xbf16> to vector<8x128xbf16>
    %21 = tpu.concatenate %9, %9, %9, %15, %16, %17, %18, %19, %20 in 1 : vector<8x128xbf16>, vector<8x128xbf16>, vector<8x128xbf16>, vector<8x128xbf16>, vector<8x128xbf16>, vector<8x128xbf16>, vector<8x128xbf16>, vector<8x128xbf16>, vector<8x128xbf16> -> vector<8x1152xbf16>
    %22 = vector.extract_strided_slice %8 {offsets = [32, 0], sizes = [8, 128], strides = [1, 1]} : vector<128x128xbf16> to vector<8x128xbf16>
    %23 = vector.extract_strided_slice %8 {offsets = [40, 0], sizes = [8, 128], strides = [1, 1]} : vector<128x128xbf16> to vector<8x128xbf16>
    %24 = vector.extract_strided_slice %8 {offsets = [64, 0], sizes = [8, 128], strides = [1, 1]} : vector<128x128xbf16> to vector<8x128xbf16>
    %25 = vector.extract_strided_slice %8 {offsets = [72, 0], sizes = [8, 128], strides = [1, 1]} : vector<128x128xbf16> to vector<8x128xbf16>
    %26 = vector.extract_strided_slice %8 {offsets = [96, 0], sizes = [8, 128], strides = [1, 1]} : vector<128x128xbf16> to vector<8x128xbf16>
    %27 = vector.extract_strided_slice %8 {offsets = [104, 0], sizes = [8, 128], strides = [1, 1]} : vector<128x128xbf16> to vector<8x128xbf16>
    %28 = tpu.concatenate %9, %22, %23, %9, %24, %25, %9, %26, %27 in 1 : vector<8x128xbf16>, vector<8x128xbf16>, vector<8x128xbf16>, vector<8x128xbf16>, vector<8x128xbf16>, vector<8x128xbf16>, vector<8x128xbf16>, vector<8x128xbf16>, vector<8x128xbf16> -> vector<8x1152xbf16>
    %29 = vector.extract_strided_slice %8 {offsets = [40, 0], sizes = [8, 128], strides = [1, 1]} : vector<128x128xbf16> to vector<8x128xbf16>
    %30 = vector.extract_strided_slice %8 {offsets = [48, 0], sizes = [8, 128], strides = [1, 1]} : vector<128x128xbf16> to vector<8x128xbf16>
    %31 = vector.extract_strided_slice %8 {offsets = [56, 0], sizes = [8, 128], strides = [1, 1]} : vector<128x128xbf16> to vector<8x128xbf16>
    %32 = vector.extract_strided_slice %8 {offsets = [72, 0], sizes = [8, 128], strides = [1, 1]} : vector<128x128xbf16> to vector<8x128xbf16>
    %33 = vector.extract_strided_slice %8 {offsets = [80, 0], sizes = [8, 128], strides = [1, 1]} : vector<128x128xbf16> to vector<8x128xbf16>
    %34 = vector.extract_strided_slice %8 {offsets = [88, 0], sizes = [8, 128], strides = [1, 1]} : vector<128x128xbf16> to vector<8x128xbf16>
    %35 = vector.extract_strided_slice %8 {offsets = [104, 0], sizes = [8, 128], strides = [1, 1]} : vector<128x128xbf16> to vector<8x128xbf16>
    %36 = vector.extract_strided_slice %8 {offsets = [112, 0], sizes = [8, 128], strides = [1, 1]} : vector<128x128xbf16> to vector<8x128xbf16>
    %37 = vector.extract_strided_slice %8 {offsets = [120, 0], sizes = [8, 128], strides = [1, 1]} : vector<128x128xbf16> to vector<8x128xbf16>
    %38 = tpu.concatenate %29, %30, %31, %32, %33, %34, %35, %36, %37 in 1 : vector<8x128xbf16>, vector<8x128xbf16>, vector<8x128xbf16>, vector<8x128xbf16>, vector<8x128xbf16>, vector<8x128xbf16>, vector<8x128xbf16>, vector<8x128xbf16>, vector<8x128xbf16> -> vector<8x1152xbf16>
    %39 = tpu.concatenate %14, %21, %28, %38 in 0 : vector<8x1152xbf16>, vector<8x1152xbf16>, vector<8x1152xbf16>, vector<8x1152xbf16> -> vector<32x1152xbf16>
    %c0_7 = arith.constant 0 : index
    %c0_8 = arith.constant 0 : index
    %40 = vector.load %arg4[%c0_7, %c0_8] : memref<1152x128xbf16, #tpu.memory_space<vmem>>, vector<1152x128xbf16>
    %cst_9 = arith.constant dense<0.000000e+00> : vector<32x128xf32>
    %41 = tpu.matmul %39, %40, %cst_9 {dimension_numbers = #tpu.dot_dimension_numbers<[1], [0], [0], [1], [0, 0, 1, 1], [], []>} : vector<32x1152xbf16>, vector<1152x128xbf16>, vector<32x128xf32> -> vector<32x128xf32>
    %c0_10 = arith.constant 0 : index
    %c0_11 = arith.constant 0 : index
    %42 = vector.load %arg5[%c0_10, %c0_11] : memref<1x128xf32, #tpu.memory_space<vmem>>, vector<1x128xf32>
    %43 = vector.broadcast %42 : vector<1x128xf32> to vector<32x128xf32>
    %44 = arith.addf %41, %43 : vector<32x128xf32>
    %cst_12 = arith.constant 0.000000e+00 : f32
    %45 = vector.broadcast %cst_12 : f32 to vector<32x128xf32>
    %46 = arith.maximumf %44, %45 : vector<32x128xf32>
    %47 = vector.extract_strided_slice %46 {offsets = [0, 0], sizes = [8, 128], strides = [1, 1]} : vector<32x128xf32> to vector<8x128xf32>
    %48 = vector.extract_strided_slice %46 {offsets = [8, 0], sizes = [8, 128], strides = [1, 1]} : vector<32x128xf32> to vector<8x128xf32>
    %49 = arith.addf %47, %48 : vector<8x128xf32>
    %50 = vector.extract_strided_slice %46 {offsets = [16, 0], sizes = [8, 128], strides = [1, 1]} : vector<32x128xf32> to vector<8x128xf32>
    %51 = arith.addf %49, %50 : vector<8x128xf32>
    %52 = vector.extract_strided_slice %46 {offsets = [24, 0], sizes = [8, 128], strides = [1, 1]} : vector<32x128xf32> to vector<8x128xf32>
    %53 = arith.addf %51, %52 : vector<8x128xf32>
    %54 = arith.truncf %53 : vector<8x128xf32> to vector<8x128xbf16>
    %c0_13 = arith.constant 0 : index
    %c0_14 = arith.constant 0 : index
    %55 = vector.load %arg6[%c0_13, %c0_14] : memref<128x128xbf16, #tpu.memory_space<vmem>>, vector<128x128xbf16>
    %cst_15 = arith.constant dense<0.000000e+00> : vector<8x128xf32>
    %56 = tpu.matmul %54, %55, %cst_15 {dimension_numbers = #tpu.dot_dimension_numbers<[1], [0], [0], [1], [0, 0, 1, 1], [], []>} : vector<8x128xbf16>, vector<128x128xbf16>, vector<8x128xf32> -> vector<8x128xf32>
    %c0_16 = arith.constant 0 : index
    %c0_17 = arith.constant 0 : index
    %57 = vector.load %arg7[%c0_16, %c0_17] : memref<1x128xf32, #tpu.memory_space<vmem>>, vector<1x128xf32>
    %58 = vector.broadcast %57 : vector<1x128xf32> to vector<8x128xf32>
    %59 = arith.addf %56, %58 : vector<8x128xf32>
    %c0_18 = arith.constant 0 : index
    %c0_19 = arith.constant 0 : index
    %60 = vector.load %arg8[%c0_18, %c0_19] : memref<8x128xf32, #tpu.memory_space<vmem>>, vector<8x128xf32>
    tpu.vector_store %arg8[%c0_18, %c0_19], %59 {strides = array<i32>} : memref<8x128xf32, #tpu.memory_space<vmem>>, vector<8x128xf32>,
    return
  }
  func.func @transform_0(%arg0: i32) -> (i32, i32) {
    %c0_i32 = arith.constant 0 : i32
    %c0_i32_0 = arith.constant 0 : i32
    return %arg0, %c0_i32 : i32, i32
  }
  func.func @transform_1(%arg0: i32) -> (i32, i32) {
    %c0_i32 = arith.constant 0 : i32
    %c0_i32_0 = arith.constant 0 : i32
    %c0_i32_1 = arith.constant 0 : i32
    return %c0_i32, %c0_i32_0 : i32, i32
  }
  func.func @transform_2(%arg0: i32) -> (i32, i32) {
    %c0_i32 = arith.constant 0 : i32
    %c0_i32_0 = arith.constant 0 : i32
    %c0_i32_1 = arith.constant 0 : i32
    return %c0_i32, %c0_i32_0 : i32, i32
  }
  func.func @transform_3(%arg0: i32) -> (i32, i32) {
    %c0_i32 = arith.constant 0 : i32
    %c0_i32_0 = arith.constant 0 : i32
    %c0_i32_1 = arith.constant 0 : i32
    return %c0_i32, %c0_i32_0 : i32, i32
  }
  func.func @transform_4(%arg0: i32) -> (i32, i32) {
    %c0_i32 = arith.constant 0 : i32
    %c0_i32_0 = arith.constant 0 : i32
    %c0_i32_1 = arith.constant 0 : i32
    return %c0_i32, %c0_i32_0 : i32, i32
  }
  func.func @transform_5(%arg0: i32) -> (i32, i32) {
    %c0_i32 = arith.constant 0 : i32
    %c0_i32_0 = arith.constant 0 : i32
    %c0_i32_1 = arith.constant 0 : i32
    return %c0_i32, %c0_i32_0 : i32, i32
  }
  func.func @transform_6(%arg0: i32) -> (i32, i32) {
    %c0_i32 = arith.constant 0 : i32
    %c0_i32_0 = arith.constant 0 : i32
    %c0_i32_1 = arith.constant 0 : i32
    return %c0_i32, %c0_i32_0 : i32, i32
  }
  func.func @transform_7(%arg0: i32) -> (i32, i32) {
    %c0_i32 = arith.constant 0 : i32
    %c0_i32_0 = arith.constant 0 : i32
    return %arg0, %c0_i32 : i32, i32
  }
}

</mosaic_0001>

<bundles_post_ra>
// kernel: _lambda_.1
= control target key start
LH: loop header
LB: loop body
LE: loop exit
PB: predicated region body
PF: predicated region fallthrough
CT: control target
= control target key end

     0   :  { %vm191_vm0 = vcmask 130048   ;;  %vm372_vm1 = vcmask 1043456   ;;  %s2335_s1 = inlined_call_operand.vmem [shape: bf16[144,128], index: 1, kind: input, shape index: {}]   ;;  %s2336_s0 = inlined_call_operand.vmem [shape: bf16[128,144], index: 0, kind: input, shape index: {}]   ;;  %s2337_s2 = inlined_call_operand.vmem [shape: f32[1,128], index: 2, kind: input, shape index: {}]   ;;  %s2338_s3 = inlined_call_operand.vmem [shape: bf16[1152,128], index: 3, kind: input, shape index: {}]   ;;  %s2339_s4 = inlined_call_operand.vmem [shape: f32[1,128], index: 4, kind: input, shape index: {}]   ;;  %s2340_s5 = inlined_call_operand.vmem [shape: bf16[128,128], index: 5, kind: input, shape index: {}]   ;;  %s2341_s6 = inlined_call_operand.vmem [shape: f32[1,128], index: 6, kind: input, shape index: {}]   ;;  %s2342_s7 = inlined_call_operand.vmem [shape: f32[8,128], index: 7, kind: output, shape index: {}]  }
   0x1   :  { %v1733_v0 = vld [vmem:[%s2335_s1 + $0x38] sm:$0xff]  ;;  %v1732_v1 = vld [vmem:[%s2335_s1 + $0x30] sm:$0xff]  ;;  %v1734_v2 = vld [vmem:[%s2335_s1 + $0x40] sm:$0xff] }
   0x2   :  { %216 = vmatpush.bf16.msra.mxu0 %v1733_v0  ;;  %v1710_v3 = vld [vmem:[%s2336_s0 + $0x4] sm:$0xf]  ;;  %v1270_v4 = vld [vmem:[%s2336_s0 + $0x8] sm:$0xf0]  ;;  %272 = vmatpush.bf16.msra.mxu1 %v1734_v2  ;;  %v1729_v8 = vld [vmem:[%s2335_s1 + $0x18] sm:$0xff] }
   0x3   :  { %v1273_v5 = vor.u32 %v1710_v3, %v1270_v4  ;;  %v1731_v6 = vld [vmem:[%s2335_s1 + $0x28] sm:$0xff]  ;;  %v1730_v7 = vld [vmem:[%s2335_s1 + $0x20] sm:$0xff]  ;;  %v1712_v9 = vld [vmem:[%s2336_s0 + $0x14] sm:$0xf] }
   0x4   :  { %v1278_v10 = vld [vmem:[%s2336_s0 + $0x18] sm:$0xf0]  ;;  %v1728_v11 = vld [vmem:[%s2335_s1 + $0x10] sm:$0xff]  ;;  %v1727_v13 = vld [vmem:[%s2335_s1 + $0x8] sm:$0xff] }
   0x5   :  { %1366 = vmatmul.msk.bf16.vlgmr.msra.gmra.mxu1 %vm191_vm0, %v1273_v5  ;;  %v1281_v12 = vor.u32 %v1712_v9, %v1278_v10  ;;  %v1726_v14 = vld [vmem:[%s2335_s1] sm:$0xff]  ;;  %v1711_v16 = vld [vmem:[%s2336_s0 + $0x4] sm:$0xf0]  ;;  %v1286_v19 = vld [vmem:[%s2336_s0 + $0x28] sm:$0xf0] }
   0x6   :  { %217 = vmatpush.bf16.msra.mxu0 %v1732_v1  ;;  %v1268_v15 = vld [vmem:[%s2336_s0] sm:$0xf]  ;;  %v1714_v18 = vld [vmem:[%s2336_s0 + $0x24] sm:$0xf]  ;;  %v1276_v21 = vld [vmem:[%s2336_s0 + $0x10] sm:$0xf] }
   0x7   :  { %v1269_v17 = vor.u32 %v1711_v16, %v1268_v15  ;;  %v1289_v20 = vor.u32 %v1714_v18, %v1286_v19  ;;  %v1713_v22 = vld [vmem:[%s2336_s0 + $0x14] sm:$0xf0]  ;;  %v1716_v24 = vld [vmem:[%s2336_s0 + $0x34] sm:$0xf]  ;;  %v1294_v25 = vld [vmem:[%s2336_s0 + $0x38] sm:$0xf0] }
   0x8   :  { %v1277_v23 = vor.u32 %v1713_v22, %v1276_v21  ;;  %v1297_v26 = vor.u32 %v1716_v24, %v1294_v25  ;;  %v1284_v27 = vld [vmem:[%s2336_s0 + $0x20] sm:$0xf]  ;;  %v1715_v28 = vld [vmem:[%s2336_s0 + $0x24] sm:$0xf0]  ;;  %v1718_v30 = vld [vmem:[%s2336_s0 + $0x44] sm:$0xf] }
   0x9   :  { %v1285_v29 = vor.u32 %v1715_v28, %v1284_v27  ;;  %v1302_v31 = vld [vmem:[%s2336_s0 + $0x48] sm:$0xf0]  ;;  %v1292_v33 = vld [vmem:[%s2336_s0 + $0x30] sm:$0xf]  ;;  %v1717_v34 = vld [vmem:[%s2336_s0 + $0x34] sm:$0xf0] }
   0xa   :  { %218 = vmatpush.bf16.msra.mxu0 %v1731_v6  ;;  %v1305_v32 = vor.u32 %v1718_v30, %v1302_v31  ;;  %v1293_v35 = vor.u32 %v1717_v34, %v1292_v33  ;;  %v1720_v36 = vld [vmem:[%s2336_s0 + $0x54] sm:$0xf]  ;;  %v1310_v37 = vld [vmem:[%s2336_s0 + $0x58] sm:$0xf0]  ;;  %v1300_v39 = vld [vmem:[%s2336_s0 + $0x40] sm:$0xf] }
   0xb   :  { %v1313_v38 = vor.u32 %v1720_v36, %v1310_v37  ;;  %v1719_v40 = vld [vmem:[%s2336_s0 + $0x44] sm:$0xf0]  ;;  %v1722_v42 = vld [vmem:[%s2336_s0 + $0x64] sm:$0xf]  ;;  %v1318_v43 = vld [vmem:[%s2336_s0 + $0x68] sm:$0xf0] }
   0xc   :  { %v1301_v41 = vor.u32 %v1719_v40, %v1300_v39  ;;  %v1321_v44 = vor.u32 %v1722_v42, %v1318_v43  ;;  %v1308_v45 = vld [vmem:[%s2336_s0 + $0x50] sm:$0xf]  ;;  %v1721_v46 = vld [vmem:[%s2336_s0 + $0x54] sm:$0xf0]  ;;  %v1724_v48 = vld [vmem:[%s2336_s0 + $0x74] sm:$0xf] }
   0xd   :  { %v1309_v47 = vor.u32 %v1721_v46, %v1308_v45  ;;  %v1326_v49 = vld [vmem:[%s2336_s0 + $0x78] sm:$0xf0]  ;;  %v1316_v51 = vld [vmem:[%s2336_s0 + $0x60] sm:$0xf]  ;;  %v1723_v52 = vld [vmem:[%s2336_s0 + $0x64] sm:$0xf0] }
   0xe   :  { %219 = vmatpush.bf16.msra.mxu0 %v1730_v7  ;;  %v1329_v50 = vor.u32 %v1724_v48, %v1326_v49  ;;  %v1317_v53 = vor.u32 %v1723_v52, %v1316_v51  ;;  %v1742_v54 = vld [vmem:[%s2338_s3 + $0x38] sm:$0xff]  ;;  %v1741_v56 = vld [vmem:[%s2338_s3 + $0x30] sm:$0xff]  ;;  %v1740_v59 = vld [vmem:[%s2338_s3 + $0x28] sm:$0xff]  ;;  %v1819_v15 = vmov 0  }
   0xf   :  { %1001 = vmatpush.bf16.msra.mxu2 %v1742_v54  ;;  %v1750_v55 = vld [vmem:[%s2338_s3 + $0x78] sm:$0xff]  ;;  %v1749_v58 = vld [vmem:[%s2338_s3 + $0x70] sm:$0xff]  ;;  %v1748_v60 = vld [vmem:[%s2338_s3 + $0x68] sm:$0xff]  ;;  %v2049_v16 = vrot.slane %v1819_v15, 4 }
  0x10   :  { %1020 = vmatpush.bf16.msra.mxu3 %v1750_v55  ;;  %v1324_v61 = vld [vmem:[%s2336_s0 + $0x70] sm:$0xf]  ;;  %v1725_v62 = vld [vmem:[%s2336_s0 + $0x74] sm:$0xf0]  ;;  %v1739_v63 = vld [vmem:[%s2338_s3 + $0x20] sm:$0xff] }
  0x11   :  { %v1325_v1 = vor.u32 %v1725_v62, %v1324_v61  ;;  %v1747_v2 = vld [vmem:[%s2338_s3 + $0x60] sm:$0xff]  ;;  %v1738_v3 = vld [vmem:[%s2338_s3 + $0x18] sm:$0xff]  ;;  %v1737_v5 = vld [vmem:[%s2338_s3 + $0x10] sm:$0xff] }
  0x12   :  { %220 = vmatpush.bf16.msra.mxu0 %v1729_v8  ;;  %v1746_v4 = vld [vmem:[%s2338_s3 + $0x58] sm:$0xff]  ;;  %v1745_v6 = vld [vmem:[%s2338_s3 + $0x50] sm:$0xff]  ;;  %v1736_v9 = vld [vmem:[%s2338_s3 + $0x8] sm:$0xff] }
  0x13   :  { %1002 = vmatpush.bf16.msra.mxu2 %v1741_v56  ;;  %v1806_v8 = vld [vmem:[%s2338_s3 + $0x238] sm:$0xff]  ;;  %v1744_v10 = vld [vmem:[%s2338_s3 + $0x48] sm:$0xff]  ;;  %vm2053_vm2 = vmneg %vm372_vm1 }
  0x14   :  { %1021 = vmatpush.bf16.msra.mxu3 %v1749_v58  ;;  %1153 = vmatpush.bf16.msrb.mxu1 %v1806_v8  ;;  %v1757_v22 = vld [vmem:[%s2338_s3 + $0xb0] sm:$0xff]  ;;  %v1756_v25 = vld [vmem:[%s2338_s3 + $0xa8] sm:$0xff]  ;;  %v1803_v31 = vld [vmem:[%s2338_s3 + $0x220] sm:$0xff] }
  0x15   :  { %1367 = vmatmul.msk.bf16.gmra.mxu1 %vm191_vm0, %v1281_v12  ;;  %v1735_v12 = vld [vmem:[%s2338_s3] sm:$0xff]  ;;  %v1804_v27 = vld [vmem:[%s2338_s3 + $0x228] sm:$0xff]  ;;  %v1765_v30 = vld [vmem:[%s2338_s3 + $0xf0] sm:$0xff] }
  0x16   :  { %221 = vmatpush.bf16.msra.mxu0 %v1728_v11  ;;  %v2041_v11 = vld [vmem:[%s2337_s2] ss:$0 sm:$0xff]  ;;  %v1754_v34 = vld [vmem:[%s2338_s3 + $0x98] sm:$0xff]  ;;  %v1764_v36 = vld [vmem:[%s2338_s3 + $0xe8] sm:$0xff] }
  0x17   :  { %1003 = vmatpush.bf16.msra.mxu2 %v1740_v59  ;;  %v1802_v37 = vld [vmem:[%s2338_s3 + $0x218] sm:$0xff]  ;;  %v1763_v43 = vld [vmem:[%s2338_s3 + $0xe0] sm:$0xff]  ;;  %v1752_v49 = vld [vmem:[%s2338_s3 + $0x88] sm:$0xff] }
  0x18   :  { %1022 = vmatpush.bf16.msra.mxu3 %v1748_v60  ;;  %v1762_v51 = vld [vmem:[%s2338_s3 + $0xd8] sm:$0xff]  ;;  %v1800_v52 = vld [vmem:[%s2338_s3 + $0x208] sm:$0xff]  ;;  %v1751_v54 = vld [vmem:[%s2338_s3 + $0x80] sm:$0xff] }
  0x19   :  { %v1761_v55 = vld [vmem:[%s2338_s3 + $0xd0] sm:$0xff]  ;;  %v1799_v56 = vld [vmem:[%s2338_s3 + $0x200] sm:$0xff]  ;;  %v1774_v59 = vld [vmem:[%s2338_s3 + $0x138] sm:$0xff] }
  0x1a   :  { %222 = vmatpush.bf16.msra.mxu0 %v1727_v13  ;;  %v1743_v13 = vld [vmem:[%s2338_s3 + $0x40] sm:$0xff]  ;;  %v1760_v60 = vld [vmem:[%s2338_s3 + $0xc8] sm:$0xff]  ;;  %v1773_v61 = vld [vmem:[%s2338_s3 + $0x130] sm:$0xff] }
  0x1b   :  { %1004 = vmatpush.bf16.msra.mxu2 %v1739_v63  ;;  %v1759_v62 = vld [vmem:[%s2338_s3 + $0xc0] sm:$0xff] }
  0x1c   :  { %1023 = vmatpush.bf16.msra.mxu3 %v1747_v2  ;;  %v1771_v8 = vld [vmem:[%s2338_s3 + $0x120] sm:$0xff] }
  0x1e   :  { %223 = vmatpush.bf16.msra.mxu0 %v1726_v14 }
  0x1f   :  { %1005 = vmatpush.bf16.msra.mxu2 %v1738_v3  ;;  %v1772_v3 = vld [vmem:[%s2338_s3 + $0x128] sm:$0xff] }
  0x20   :  { %1024 = vmatpush.bf16.msra.mxu3 %v1746_v4 }
  0x21   :  { %224 = vmatmul.bf16.vlgmr.msra.gmra.mxu0 %v1269_v17 }
  0x23   :  { %1006 = vmatpush.bf16.msra.mxu2 %v1737_v5  ;;  %v1782_v5 = vld [vmem:[%s2338_s3 + $0x178] sm:$0xff] }
  0x24   :  { %1025 = vmatpush.bf16.msra.mxu3 %v1745_v6 }
  0x25   :  { %1368 = vmatmul.msk.bf16.gmra.mxu1 %vm191_vm0, %v1289_v20  ;;  %v1758_v20 = vld [vmem:[%s2338_s3 + $0xb8] sm:$0xff] }
  0x27   :  { %1007 = vmatpush.bf16.msra.mxu2 %v1736_v9 }
  0x28   :  { %1026 = vmatpush.bf16.msra.mxu3 %v1744_v10  ;;  %v1781_v10 = vld [vmem:[%s2338_s3 + $0x170] sm:$0xff] }
  0x2b   :  { %1008 = vmatpush.bf16.msra.mxu2 %v1735_v12 }
  0x2c   :  { %1027 = vmatpush.bf16.msra.mxu3 %v1743_v13 }
  0x2e   :  { %1663 = vmatmul.msk.bf16.vlgmr.msra.gmra.mxu2 %vm2053_vm2, %v2049_v16 }
  0x2f   :  { %1667 = vmatmul.msk.bf16.vlgmr.msra.gmra.mxu3 %vm2053_vm2, %v2049_v16  ;;  %1039 = vmatpush.bf16.msrb.mxu2 %v1758_v20 }
  0x31   :  { %229 = vmatmul.bf16.gmra.mxu0 %v1277_v23  ;;  %v1805_v23 = vld [vmem:[%s2338_s3 + $0x230] sm:$0xff] }
  0x32   :  { %1154 = vmatpush.bf16.msrb.mxu1 %v1805_v23 }
  0x33   :  { %1040 = vmatpush.bf16.msrb.mxu2 %v1757_v22 }
  0x35   :  { %1369 = vmatmul.msk.bf16.gmra.mxu1 %vm191_vm0, %v1297_v26  ;;  %v1766_v26 = vld [vmem:[%s2338_s3 + $0xf8] sm:$0xff] }
  0x36   :  { %1058 = vmatpush.bf16.msrb.mxu3 %v1766_v26  ;;  %1155 = vmatpush.bf16.msrb.mxu1 %v1804_v27  ;;  %v1779_v27 = vld [vmem:[%s2338_s3 + $0x160] sm:$0xff] }
  0x37   :  { %1041 = vmatpush.bf16.msrb.mxu2 %v1756_v25  ;;  %v1769_v25 = vld [vmem:[%s2338_s3 + $0x110] sm:$0xff] }
  0x3a   :  { %1059 = vmatpush.bf16.msrb.mxu3 %v1765_v30  ;;  %1156 = vmatpush.bf16.msrb.mxu1 %v1803_v31 }
  0x3e   :  { %1060 = vmatpush.bf16.msrb.mxu3 %v1764_v36  ;;  %1157 = vmatpush.bf16.msrb.mxu1 %v1802_v37  ;;  %v1778_v36 = vld [vmem:[%s2338_s3 + $0x158] sm:$0xff] }
  0x41   :  { %234 = vmatmul.bf16.gmra.mxu0 %v1285_v29  ;;  %v1755_v29 = vld [vmem:[%s2338_s3 + $0xa0] sm:$0xff] }
  0x42   :  { %1042 = vmatpush.bf16.msrb.mxu2 %v1755_v29  ;;  %1061 = vmatpush.bf16.msrb.mxu3 %v1763_v43 }
  0x45   :  { %1370 = vmatmul.msk.bf16.gmra.mxu1 %vm191_vm0, %v1305_v32 }
  0x46   :  { %1043 = vmatpush.bf16.msrb.mxu2 %v1754_v34  ;;  %1062 = vmatpush.bf16.msrb.mxu3 %v1762_v51 }
  0x4a   :  { %1063 = vmatpush.bf16.msrb.mxu3 %v1761_v55  ;;  %v1788_v55 = vld [vmem:[%s2338_s3 + $0x1a8] sm:$0xff] }
  0x4e   :  { %1064 = vmatpush.bf16.msrb.mxu3 %v1760_v60 }
  0x51   :  { %239 = vmatmul.bf16.gmra.mxu0 %v1293_v35 }
  0x52   :  { %1065 = vmatpush.bf16.msrb.mxu3 %v1759_v62 }
  0x55   :  { %1371 = vmatmul.msk.bf16.gmra.mxu1 %vm191_vm0, %v1313_v38 }
  0x56   :  { %1096 = vmatpush.bf16.msra.mxu3 %v1782_v5 }
  0x5a   :  { %1097 = vmatpush.bf16.msra.mxu3 %v1781_v10  ;;  %v1794_v10 = vld [vmem:[%s2338_s3 + $0x1d8] sm:$0xff] }
  0x61   :  { %244 = vmatmul.bf16.gmra.mxu0 %v1301_v41  ;;  %v1753_v41 = vld [vmem:[%s2338_s3 + $0x90] sm:$0xff] }
  0x62   :  { %1044 = vmatpush.bf16.msrb.mxu2 %v1753_v41  ;;  %v1777_v41 = vld [vmem:[%s2338_s3 + $0x150] sm:$0xff] }
  0x65   :  { %1372 = vmatmul.msk.bf16.gmra.mxu1 %vm191_vm0, %v1321_v44  ;;  %v1801_v44 = vld [vmem:[%s2338_s3 + $0x210] sm:$0xff] }
  0x66   :  { %1158 = vmatpush.bf16.msrb.mxu1 %v1801_v44  ;;  %1045 = vmatpush.bf16.msrb.mxu2 %v1752_v49  ;;  %v1789_v49 = vld [vmem:[%s2338_s3 + $0x1b0] sm:$0xff] }
  0x6a   :  { %1159 = vmatpush.bf16.msrb.mxu1 %v1800_v52  ;;  %1046 = vmatpush.bf16.msrb.mxu2 %v1751_v54 }
  0x6e   :  { %1160 = vmatpush.bf16.msrb.mxu1 %v1799_v56  ;;  %1077 = vmatpush.bf16.msra.mxu2 %v1774_v59  ;;  %v1798_v56 = vld [vmem:[%s2338_s3 + $0x1f8] sm:$0xff]  ;;  %v1797_v59 = vld [vmem:[%s2338_s3 + $0x1f0] sm:$0xff] }
  0x71   :  { %249 = vmatmul.bf16.gmra.mxu0 %v1309_v47 }
  0x72   :  { %1078 = vmatpush.bf16.msra.mxu2 %v1773_v61 }
  0x75   :  { %1373 = vmatmul.msk.bf16.gmra.mxu1 %vm191_vm0, %v1329_v50 }
  0x76   :  { %1079 = vmatpush.bf16.msra.mxu2 %v1772_v3  ;;  %v1785_v3 = vld [vmem:[%s2338_s3 + $0x190] sm:$0xff] }
  0x7a   :  { %1080 = vmatpush.bf16.msra.mxu2 %v1771_v8  ;;  %v1784_v8 = vld [vmem:[%s2338_s3 + $0x188] sm:$0xff] }
  0x81   :  { %254 = vmatmul.bf16.gmra.mxu0 %v1317_v53 }
  0x82   :  { %v274_v57 = vpop.f32.mrf.mxu1 }
  0x8a   :  { %v2012_v0 = vpop.f32.mrf.mxu1 }
  0x91   :  { %259 = vmatmul.bf16.gmra.mxu0 %v1325_v1 }
  0x92   :  { %v279_v7 = vpop.f32.mrf.mxu1 }
  0x9a   :  { %v281_v19 = vpop.f32.mrf.mxu1 }
  0x9e   :  { %v225_v14 = vpop.f32.mrf.mxu0 }
  0x9f   :  { %v226_v17 = vadd.f32 %v2041_v11, %v225_v14 }
  0xa1   :  { %v275_v21 = vadd.f32 %v274_v57, %v226_v17 }
  0xa2   :  { %v2083_v28 = vpop.f32.mrf.mxu1 }
  0xa3   :  { %v314_v38 = vmax.f32 %v275_v21, 0.0  ;;  %v1780_v21 = vld [vmem:[%s2338_s3 + $0x168] sm:$0xff] }
  0xa4   :  { %1098 = vmatpush.bf16.msra.mxu3 %v1780_v21 }
  0xa5   :  { %v330_v46 = vpack.c.bf16 %v314_v38, %v314_v38 }
  0xa6   :  { %v2072_v24 = vpop.f32.mrf.mxu0 }
  0xa8   :  { %1099 = vmatpush.bf16.msra.mxu3 %v1779_v27 }
  0xaa   :  { %v286_v40 = vpop.f32.mrf.mxu1 }
  0xac   :  { %1100 = vmatpush.bf16.msra.mxu3 %v1778_v36 }
  0xae   :  { %v230_v32 = vpop.f32.mrf.mxu0 }
  0xaf   :  { %v231_v33 = vadd.f32 %v2041_v11, %v230_v32  ;;  %v228_v32 = vadd.f32 %v2041_v11, %v2072_v24 }
  0xb0   :  { %1101 = vmatpush.bf16.msra.mxu3 %v1777_v41 }
  0xb1   :  { %v280_v35 = vadd.f32 %v279_v7, %v231_v33  ;;  %v1768_v33 = vld [vmem:[%s2338_s3 + $0x108] sm:$0xff]  ;;  %v277_v24 = vadd.f32 %v2012_v0, %v228_v32 }
  0xb2   :  { %v289_v58 = vpop.f32.mrf.mxu1 }
  0xb3   :  { %v316_v39 = vmax.f32 %v280_v35, 0.0  ;;  %v315_v44 = vmax.f32 %v277_v24, 0.0 }
  0xb5   :  { %v332_v42 = vpack.c.bf16 %v316_v39, %v316_v39  ;;  %v1767_v39 = vld [vmem:[%s2338_s3 + $0x100] sm:$0xff] }
  0xb6   :  { %v232_v45 = vpop.f32.mrf.mxu0 }
  0xb7   :  { %v355_v47 = vrot.slane %v332_v42, 4  ;;  %v233_v48 = vadd.f32 %v2041_v11, %v232_v45  ;;  %v1790_v45 = vld [vmem:[%s2338_s3 + $0x1b8] sm:$0xff] }
  0xb9   :  { %v2117_v50 = vadd.f32 %v281_v19, %v233_v48  ;;  %v2126_v53 = vsel %vm372_vm1, %v330_v46, %v355_v47  ;;  %v1770_v19 = vld [vmem:[%s2338_s3 + $0x118] sm:$0xff]  ;;  %v1776_v46 = vld [vmem:[%s2338_s3 + $0x148] sm:$0xff]  ;;  %v2219_v47 = vpack.c.bf16 %v315_v44, %v315_v44 }
  0xba   :  { %v291_v2 = vpop.f32.mrf.mxu1  ;;  %1081 = vmatpush.bf16.msra.mxu2 %v1770_v19  ;;  %1102 = vmatpush.bf16.msra.mxu3 %v1776_v46  ;;  %v1793_v19 = vld [vmem:[%s2338_s3 + $0x1d0] sm:$0xff] }
  0xbb   :  { %v354_v52 = vrot.slane %v2219_v47, 4 }
  0xbe   :  { %v235_v57 = vpop.f32.mrf.mxu0  ;;  %1082 = vmatpush.bf16.msra.mxu2 %v1769_v25 }
  0xbf   :  { %v236_v6 = vadd.f32 %v2041_v11, %v235_v57 }
  0xc1   :  { %v285_v13 = vadd.f32 %v2083_v28, %v236_v6 }
  0xc2   :  { %v2168_v17 = vpop.f32.mrf.mxu1  ;;  %1083 = vmatpush.bf16.msra.mxu2 %v1768_v33 }
  0xc3   :  { %v318_v22 = vmax.f32 %v285_v13, 0.0  ;;  %v1783_v13 = vld [vmem:[%s2338_s3 + $0x180] sm:$0xff] }
  0xc5   :  { %v334_v29 = vpack.c.bf16 %v318_v22, %v318_v22 }
  0xc6   :  { %v237_v63 = vpop.f32.mrf.mxu0  ;;  %1084 = vmatpush.bf16.msra.mxu2 %v1767_v39 }
  0xc7   :  { %v238_v1 = vadd.f32 %v2041_v11, %v237_v63  ;;  %v1786_v63 = vld [vmem:[%s2338_s3 + $0x198] sm:$0xff] }
  0xc9   :  { %v287_v4 = vadd.f32 %v286_v40, %v238_v1  ;;  %v1796_v1 = vld [vmem:[%s2338_s3 + $0x1e8] sm:$0xff] }
  0xca   :  { %v296_v37 = vpop.f32.mrf.mxu1 }
  0xcb   :  { %v319_v7 = vmax.f32 %v287_v4, 0.0  ;;  %v1795_v4 = vld [vmem:[%s2338_s3 + $0x1e0] sm:$0xff] }
  0xcd   :  { %v2160_v9 = vpack.c.bf16 %v319_v7, %v319_v7 }
  0xce   :  { %v240_v12 = vpop.f32.mrf.mxu0 }
  0xcf   :  { %v241_v14 = vadd.f32 %v2041_v11, %v240_v12  ;;  %v357_v15 = vrot.slane %v2160_v9, 4 }
  0xd1   :  { %v290_v20 = vadd.f32 %v289_v58, %v241_v14  ;;  %1665 = vmatmul.msk.bf16.gmra.mxu2 %vm2053_vm2, %v357_v15  ;;  %v1787_v58 = vld [vmem:[%s2338_s3 + $0x1a0] sm:$0xff]  ;;  %v317_v14 = vmax.f32 %v2117_v50, 0.0 }
  0xd2   :  { %v299_v48 = vpop.f32.mrf.mxu1  ;;  %v1791_v50 = vld [vmem:[%s2338_s3 + $0x1c0] sm:$0xff] }
  0xd3   :  { %v320_v23 = vmax.f32 %v290_v20, 0.0  ;;  %v333_v22 = vpack.c.bf16 %v317_v14, %v317_v14 }
  0xd5   :  { %v336_v26 = vpack.c.bf16 %v320_v23, %v320_v23  ;;  %v1792_v23 = vld [vmem:[%s2338_s3 + $0x1c8] sm:$0xff] }
  0xd6   :  { %v242_v28 = vpop.f32.mrf.mxu0 }
  0xd7   :  { %v358_v30 = vrot.slane %v336_v26, 4  ;;  %v243_v31 = vadd.f32 %v2041_v11, %v242_v28  ;;  %v356_v28 = vrot.slane %v333_v22, 4 }
  0xd9   :  { %v292_v34 = vadd.f32 %v291_v2, %v243_v31  ;;  %v2193_v35 = vsel %vm372_vm1, %v334_v29, %v358_v30  ;;  %v386_v33 = vsel %vm372_vm1, %v2219_v47, %v356_v28 }
  0xda   :  { %1033 = vmatmul.bf16.gmra.mxu3 %v2193_v35  ;;  %v301_v61 = vpop.f32.mrf.mxu1 }
  0xdb   :  { %v321_v38 = vmax.f32 %v292_v34, 0.0 }
  0xdd   :  { %v337_v40 = vpack.c.bf16 %v321_v38, %v321_v38 }
  0xde   :  { %v2206_v42 = vpop.f32.mrf.mxu0 }
  0xdf   :  { %v359_v43 = vrot.slane %v337_v40, 4  ;;  %v246_v25 = vadd.f32 %v2041_v11, %v2206_v42 }
  0xe1   :  { %1669 = vmatmul.msk.bf16.vlgmr.msrb.gmra.mxu2 %vm2053_vm2, %v2049_v16  ;;  %v397_v0 = vsel %vm372_vm1, %v2160_v9, %v359_v43  ;;  %v1775_v16 = vld [vmem:[%s2338_s3 + $0x140] sm:$0xff]  ;;  %v295_v30 = vadd.f32 %v2168_v17, %v246_v25 }
  0xe2   :  { %1161 = vmatmul.bf16.vlgmr.msrb.gmra.mxu1 %v397_v0  ;;  %1115 = vmatpush.bf16.msrb.mxu2 %v1790_v45  ;;  %v2255_v7 = vpop.f32.mrf.mxu1 }
  0xe3   :  { %1103 = vmatpush.bf16.msra.mxu3 %v1775_v16  ;;  %v322_v34 = vmax.f32 %v295_v30, 0.0 }
  0xe5   :  { %v338_v24 = vpack.c.bf16 %v322_v34, %v322_v34 }
  0xe6   :  { %v247_v51 = vpop.f32.mrf.mxu0  ;;  %1116 = vmatpush.bf16.msrb.mxu2 %v1789_v49  ;;  %v1814_v49 = vld [vmem:[%s2340_s5 + $0x38] sm:$0xff] }
  0xe7   :  { %v248_v54 = vadd.f32 %v2041_v11, %v247_v51  ;;  %1248 = vmatpush.bf16.msrb.mxu0 %v1814_v49 }
  0xe9   :  { %v297_v57 = vadd.f32 %v296_v37, %v248_v54 }
  0xea   :  { %1671 = vmatmul.msk.bf16.vlgmr.msrb.gmra.mxu3 %vm2053_vm2, %v354_v52  ;;  %1117 = vmatpush.bf16.msrb.mxu2 %v1788_v55  ;;  %v306_v26 = vpop.f32.mrf.mxu1  ;;  %v1817_v55 = vld [vmem:[%s2339_s4] ss:$0 sm:$0xff] }
  0xeb   :  { %1134 = vmatpush.bf16.msrb.mxu3 %v1798_v56  ;;  %v323_v62 = vmax.f32 %v297_v57, 0.0  ;;  %v1010_v57 = vpop.f32.mrf.mxu2 }
  0xed   :  { %v339_v2 = vpack.c.bf16 %v323_v62, %v323_v62 }
  0xee   :  { %v250_v60 = vpop.f32.mrf.mxu0  ;;  %1118 = vmatpush.bf16.msrb.mxu2 %v1787_v58  ;;  %v1011_v58 = vadd.f32 %v1817_v55, %v1010_v57 }
  0xef   :  { %1135 = vmatpush.bf16.msrb.mxu3 %v1797_v59  ;;  %v366_v6 = vrot.slane %v339_v2, 4  ;;  %v251_v12 = vadd.f32 %v2041_v11, %v250_v60  ;;  %v1029_v60 = vpop.f32.mrf.mxu3 }
  0xf1   :  { %1052 = vmatmul.bf16.gmra.mxu2 %v397_v0  ;;  %v300_v21 = vadd.f32 %v299_v48, %v251_v12 }
  0xf2   :  { %1119 = vmatpush.bf16.msrb.mxu2 %v1786_v63  ;;  %v309_v37 = vpop.f32.mrf.mxu1 }
  0xf3   :  { %1136 = vmatpush.bf16.msrb.mxu3 %v1796_v1  ;;  %v324_v27 = vmax.f32 %v300_v21, 0.0  ;;  %v1012_v1 = vpop.f32.mrf.mxu2  ;;  %v1811_v21 = vld [vmem:[%s2340_s5 + $0x20] sm:$0xff] }
  0xf5   :  { %v340_v31 = vpack.c.bf16 %v324_v27, %v324_v27 }
  0xf6   :  { %v252_v5 = vpop.f32.mrf.mxu0  ;;  %1120 = vmatpush.bf16.msrb.mxu2 %v1785_v3 }
  0xf7   :  { %1137 = vmatpush.bf16.msrb.mxu3 %v1795_v4  ;;  %v253_v29 = vadd.f32 %v2041_v11, %v252_v5  ;;  %v367_v36 = vrot.slane %v340_v31, 4 }
  0xf9   :  { %v302_v32 = vadd.f32 %v301_v61, %v253_v29  ;;  %v404_v40 = vsel %vm372_vm1, %v338_v24, %v367_v36  ;;  %v1030_v61 = vadd.f32 %v1029_v60, %v1011_v58 }
  0xfa   :  { %1673 = vmatmul.msk.bf16.gmra.mxu3 %vm2053_vm2, %v366_v6  ;;  %1121 = vmatpush.bf16.msrb.mxu2 %v1784_v8  ;;  %v311_v45 = vpop.f32.mrf.mxu1 }
  0xfb   :  { %1138 = vmatpush.bf16.msrb.mxu3 %v1794_v10  ;;  %v325_v38 = vmax.f32 %v302_v32, 0.0 }
  0xfd   :  { %v341_v41 = vpack.c.bf16 %v325_v38, %v325_v38 }
  0xfe   :  { %v255_v20 = vpop.f32.mrf.mxu0  ;;  %1122 = vmatpush.bf16.msrb.mxu2 %v1783_v13 }
  0xff   :  { %1139 = vmatpush.bf16.msrb.mxu3 %v1793_v19  ;;  %v368_v17 = vrot.slane %v341_v41, 4  ;;  %v256_v62 = vadd.f32 %v2041_v11, %v255_v20  ;;  %v1808_v41 = vld [vmem:[%s2340_s5 + $0x8] sm:$0xff] }
 0x101   :  { %1085 = vmatmul.bf16.vlgmr.msra.gmra.mxu2 %v2126_v53  ;;  %v408_v48 = vsel %vm372_vm1, %v339_v2, %v368_v17  ;;  %v1013_v2 = vadd.f32 %v1817_v55, %v1012_v1  ;;  %v305_v9 = vadd.f32 %v2255_v7, %v256_v62  ;;  %v1812_v7 = vld [vmem:[%s2340_s5 + $0x28] sm:$0xff] }
 0x103   :  { %1140 = vmatpush.bf16.msrb.mxu3 %v1792_v23  ;;  %v326_v6 = vmax.f32 %v305_v9, 0.0 }
 0x105   :  { %v342_v10 = vpack.c.bf16 %v326_v6, %v326_v6 }
 0x106   :  { %v257_v53 = vpop.f32.mrf.mxu0 }
 0x107   :  { %1141 = vmatpush.bf16.msrb.mxu3 %v1791_v50  ;;  %v258_v42 = vadd.f32 %v2041_v11, %v257_v53  ;;  %v1810_v53 = vld [vmem:[%s2340_s5 + $0x18] sm:$0xff] }
 0x109   :  { %v307_v43 = vadd.f32 %v306_v26, %v258_v42 }
 0x10a   :  { %1104 = vmatmul.bf16.vlgmr.msra.gmra.mxu3 %v386_v33 }
 0x10b   :  { %v327_v46 = vmax.f32 %v307_v43, 0.0 }
 0x10d   :  { %v343_v51 = vpack.c.bf16 %v327_v46, %v327_v46 }
 0x10e   :  { %v260_v39 = vpop.f32.mrf.mxu0 }
 0x10f   :  { %v261_v59 = vadd.f32 %v2041_v11, %v260_v39  ;;  %v369_v5 = vrot.slane %v343_v51, 4 }
 0x111   :  { %1090 = vmatmul.bf16.gmra.mxu2 %v404_v40  ;;  %v310_v63 = vadd.f32 %v309_v37, %v261_v59  ;;  %v1809_v37 = vld [vmem:[%s2340_s5 + $0x10] sm:$0xff] }
 0x113   :  { %v328_v3 = vmax.f32 %v310_v63, 0.0 }
 0x115   :  { %v344_v8 = vpack.c.bf16 %v328_v3, %v328_v3 }
 0x116   :  { %v262_v44 = vpop.f32.mrf.mxu0 }
 0x117   :  { %v263_v0 = vadd.f32 %v2041_v11, %v262_v44  ;;  %v370_v12 = vrot.slane %v344_v8, 4 }
 0x119   :  { %v312_v47 = vadd.f32 %v311_v45, %v263_v0  ;;  %v415_v11 = vsel %vm372_vm1, %v342_v10, %v370_v12  ;;  %v1807_v0 = vld [vmem:[%s2340_s5] sm:$0xff] }
 0x11a   :  { %1109 = vmatmul.bf16.gmra.mxu3 %v408_v48 }
 0x11b   :  { %v329_v16 = vmax.f32 %v312_v47, 0.0 }
 0x11d   :  { %v345_v52 = vpack.c.bf16 %v329_v16, %v329_v16 }
 0x11f   :  { %v371_v54 = vrot.slane %v345_v52, 4 }
 0x121   :  { %1675 = vmatmul.msk.bf16.vlgmr.msrb.gmra.mxu2 %vm2053_vm2, %v357_v15  ;;  %v419_v56 = vsel %vm372_vm1, %v343_v51, %v371_v54  ;;  %v1031_v15 = vpop.f32.mrf.mxu3 }
 0x122   :  { %1166 = vmatmul.bf16.gmra.mxu1 %v419_v56  ;;  %v1032_v4 = vadd.f32 %v1031_v15, %v1013_v2 }
 0x12a   :  { %1142 = vmatmul.bf16.vlgmr.msrb.gmra.mxu3 %v2193_v35  ;;  %v1813_v35 = vld [vmem:[%s2340_s5 + $0x30] sm:$0xff] }
 0x12b   :  { %1249 = vmatpush.bf16.msrb.mxu0 %v1813_v35 }
 0x12f   :  { %1250 = vmatpush.bf16.msrb.mxu0 %v1812_v7 }
 0x131   :  { %1677 = vmatmul.msk.bf16.gmra.mxu2 %vm2053_vm2, %v369_v5 }
 0x133   :  { %1251 = vmatpush.bf16.msrb.mxu0 %v1811_v21 }
 0x137   :  { %1252 = vmatpush.bf16.msrb.mxu0 %v1810_v53 }
 0x13a   :  { %1147 = vmatmul.bf16.gmra.mxu3 %v415_v11 }
 0x13b   :  { %1253 = vmatpush.bf16.msrb.mxu0 %v1809_v37 }
 0x13f   :  { %1254 = vmatpush.bf16.msrb.mxu0 %v1808_v41 }
 0x143   :  { %1255 = vmatpush.bf16.msrb.mxu0 %v1807_v0 }
 0x154   :  { %v1015_v13 = vpop.f32.mrf.mxu2 }
 0x155   :  { %v1016_v14 = vadd.f32 %v1817_v55, %v1015_v13 }
 0x15c   :  { %v1017_v19 = vpop.f32.mrf.mxu2 }
 0x15d   :  { %v1034_v18 = vpop.f32.mrf.mxu3  ;;  %v1018_v22 = vadd.f32 %v1817_v55, %v1017_v19 }
 0x15e   :  { %v1035_v20 = vadd.f32 %v1034_v18, %v1016_v14 }
 0x15f   :  { %v1162_v47 = vpop.f32.mrf.mxu1 }
 0x164   :  { %v1048_v23 = vpop.f32.mrf.mxu2 }
 0x165   :  { %v1049_v25 = vadd.f32 %v1048_v23, %v1030_v61  ;;  %v1036_v26 = vpop.f32.mrf.mxu3 }
 0x166   :  { %v1037_v50 = vadd.f32 %v1036_v26, %v1018_v22 }
 0x167   :  { %v1164_v59 = vpop.f32.mrf.mxu1 }
 0x16c   :  { %v1050_v27 = vpop.f32.mrf.mxu2 }
 0x16d   :  { %v1051_v28 = vadd.f32 %v1050_v27, %v1032_v4  ;;  %v1067_v29 = vpop.f32.mrf.mxu3 }
 0x16e   :  { %v1068_v30 = vadd.f32 %v1067_v29, %v1049_v25  ;;  %v1818_v29 = vld [vmem:[%s2341_s6] ss:$0 sm:$0xff] }
 0x174   :  { %v1053_v31 = vpop.f32.mrf.mxu2 }
 0x175   :  { %v1069_v32 = vpop.f32.mrf.mxu3  ;;  %v1054_v57 = vadd.f32 %v1053_v31, %v1035_v20 }
 0x176   :  { %v1070_v33 = vadd.f32 %v1069_v32, %v1051_v28 }
 0x17c   :  { %v1055_v34 = vpop.f32.mrf.mxu2 }
 0x17d   :  { %v1072_v36 = vpop.f32.mrf.mxu3  ;;  %v1056_v5 = vadd.f32 %v1055_v34, %v1037_v50 }
 0x17e   :  { %v1073_v61 = vadd.f32 %v1072_v36, %v1054_v57 }
 0x184   :  { %v1086_v38 = vpop.f32.mrf.mxu2 }
 0x185   :  { %v1074_v24 = vpop.f32.mrf.mxu3  ;;  %v1087_v48 = vadd.f32 %v1086_v38, %v1068_v30 }
 0x186   :  { %v1075_v11 = vadd.f32 %v1074_v24, %v1056_v5 }
 0x18c   :  { %v1088_v39 = vpop.f32.mrf.mxu2 }
 0x18d   :  { %v1105_v40 = vpop.f32.mrf.mxu3  ;;  %v1089_v52 = vadd.f32 %v1088_v39, %v1070_v33 }
 0x18e   :  { %v1106_v51 = vadd.f32 %v1105_v40, %v1087_v48 }
 0x194   :  { %v1091_v42 = vpop.f32.mrf.mxu2 }
 0x195   :  { %v1107_v17 = vpop.f32.mrf.mxu3  ;;  %v1092_v2 = vadd.f32 %v1091_v42, %v1073_v61 }
 0x196   :  { %v1108_v55 = vadd.f32 %v1107_v17, %v1089_v52 }
 0x19c   :  { %v1093_v43 = vpop.f32.mrf.mxu2 }
 0x19d   :  { %v1110_v44 = vpop.f32.mrf.mxu3  ;;  %v1094_v7 = vadd.f32 %v1093_v43, %v1075_v11 }
 0x19e   :  { %v1111_v3 = vadd.f32 %v1110_v44, %v1092_v2 }
 0x19f   :  { %v1167_v10 = vpop.f32.mrf.mxu1 }
 0x1a4   :  { %v1124_v45 = vpop.f32.mrf.mxu2 }
 0x1a5   :  { %v1112_v46 = vpop.f32.mrf.mxu3  ;;  %v1125_v54 = vadd.f32 %v1124_v45, %v1106_v51 }
 0x1a6   :  { %v1113_v19 = vadd.f32 %v1112_v46, %v1094_v7 }
 0x1a7   :  { %v1169_v25 = vpop.f32.mrf.mxu1 }
 0x1ac   :  { %v1126_v49 = vpop.f32.mrf.mxu2 }
 0x1ad   :  { %v1143_v16 = vpop.f32.mrf.mxu3  ;;  %v1127_v58 = vadd.f32 %v1126_v49, %v1108_v55 }
 0x1ae   :  { %v1144_v56 = vadd.f32 %v1143_v16, %v1125_v54 }
 0x1b0   :  { %v1163_v62 = vadd.f32 %v1162_v47, %v1144_v56 }
 0x1b2   :  { %v1172_v15 = vmax.f32 %v1163_v62, 0.0 }
 0x1b4   :  { %v1129_v1 = vpop.f32.mrf.mxu2 }
 0x1b5   :  { %v1145_v60 = vpop.f32.mrf.mxu3  ;;  %v1130_v6 = vadd.f32 %v1129_v1, %v1111_v3 }
 0x1b6   :  { %v1146_v63 = vadd.f32 %v1145_v60, %v1127_v58 }
 0x1b8   :  { %v1165_v9 = vadd.f32 %v1164_v59, %v1146_v63 }
 0x1ba   :  { %v1173_v4 = vmax.f32 %v1165_v9, 0.0 }
 0x1bc   :  { %v1176_v8 = vadd.f32 %v1173_v4, %v1172_v15  ;;  %v1131_v14 = vpop.f32.mrf.mxu2 }
 0x1bd   :  { %v1148_v12 = vpop.f32.mrf.mxu3  ;;  %v1132_v20 = vadd.f32 %v1131_v14, %v1113_v19 }
 0x1be   :  { %v1149_v35 = vadd.f32 %v1148_v12, %v1130_v6 }
 0x1c0   :  { %v1168_v13 = vadd.f32 %v1167_v10, %v1149_v35 }
 0x1c2   :  { %v1174_v18 = vmax.f32 %v1168_v13, 0.0 }
 0x1c4   :  { %v1177_v21 = vadd.f32 %v1176_v8, %v1174_v18 }
 0x1c5   :  { %v1150_v22 = vpop.f32.mrf.mxu3 }
 0x1c6   :  { %v1151_v23 = vadd.f32 %v1150_v22, %v1132_v20 }
 0x1c8   :  { %v1170_v26 = vadd.f32 %v1169_v25, %v1151_v23 }
 0x1ca   :  { %v1175_v27 = vmax.f32 %v1170_v26, 0.0 }
 0x1cc   :  { %v1178_v28 = vadd.f32 %v1177_v21, %v1175_v27 }
 0x1ce   :  { %v1179_v50 = vpack.c.bf16 %v1178_v28, %v1178_v28 }
 0x1d0   :  { %1256 = vmatmul.bf16.vlgmr.msrb.gmra.mxu0 %v1179_v50 }
 0x24d   :  { %v1257_v30 = vpop.f32.mrf.mxu0 }
 0x24e   :  { %v1258_v53 = vadd.f32 %v1818_v29, %v1257_v30 }
 0x250   :  { %1261 = vst [vmem:[%s2342_s7] sm:$0xff] %v1258_v53 }
 0x255   :  { %v1259_v31 = vpop.f32.mrf.mxu0 }

</bundles_post_ra>
